<compile_context>
chip_gen: v6e
topology: v6e:2x2x1
jax: 0.10.0
libtpu: 0.0.40
codegen_flags: <defaults>
</compile_context>

<pallas_src>
import functools

import jax
import jax.numpy as jnp
from jax import lax
from jax.experimental import pallas as pl
from jax.experimental.pallas import tpu as pltpu


def _round_up(x, m):
    return ((x + m - 1) // m) * m


def _mean_pool_kernel(h_ref, m_ref, o_ref, acc_emb, acc_msk, *,
                      seq_len, block_seq, mask_seq_edge, precision):
    # h_ref: (TB, TS, TH)   m_ref: (TB, TS)   o_ref: (TB, TH)
    # acc_emb: VMEM (TB, TH) f32   acc_msk: VMEM (TB, 1) f32
    s_idx = pl.program_id(2)

    @pl.when(s_idx == 0)
    def _init():
        acc_emb[...] = jnp.zeros_like(acc_emb)
        acc_msk[...] = jnp.zeros_like(acc_msk)

    h = h_ref[...]                       # native dtype (bf16 stays bf16)
    m = m_ref[...]                       # already cast to h dtype in wrapper

    if mask_seq_edge:
        # Ragged sequence edge: zero mask AND hidden states past the true
        # sequence length (static Python branch -> zero cost when S % TS == 0).
        seq_off = s_idx * block_seq
        valid2 = (lax.broadcasted_iota(jnp.int32, m.shape, 1) + seq_off) < seq_len
        valid3 = (lax.broadcasted_iota(jnp.int32, h.shape, 1) + seq_off) < seq_len
        m = jnp.where(valid2, m, jnp.zeros_like(m))
        h = jnp.where(valid3, h, jnp.zeros_like(h))

    # Masked sum over this sequence tile on the MXU, accumulating in f32.
    part = jnp.einsum("bqs,bsh->bqh", m[:, None, :], h,
                      preferred_element_type=jnp.float32, precision=precision)
    acc_emb[...] += part[:, 0, :]
    acc_msk[...] += jnp.sum(m.astype(jnp.float32), axis=1, keepdims=True)

    @pl.when(s_idx == pl.num_programs(2) - 1)
    def _finalize():
        denom = jnp.maximum(acc_msk[...], 1e-9)          # torch.clamp(min=1e-9)
        o_ref[...] = (acc_emb[...] / denom).astype(o_ref.dtype)


def mean_pooling(last_hidden_state, attention_mask, *,
                 block_batch=8, block_bytes=8 << 20, precision=None):
    """Masked mean pooling over the sequence dimension.

    last_hidden_state: [B, S, H] float (f32 or bf16)
    attention_mask:    [B, S]    (int / bool / float, 0/1 values)
    returns:           [B, H]    float32
    """
    assert last_hidden_state.ndim == 3
    B, S, H = last_hidden_state.shape
    assert attention_mask.shape == (B, S)

    h = last_hidden_state
    h_dtype = h.dtype
    itemsize = jnp.dtype(h_dtype).itemsize

    # Cast the (tiny) mask once so the kernel sees the matmul dtype directly
    # (0/1 values are exact in bf16/f32); removes per-tile cast chains.
    m = attention_mask.astype(h_dtype)

    # ---- batch tiling -------------------------------------------------------
    TB = block_batch if B >= block_batch else B       # TB == B keeps small-B blocks legal
    nb = pl.cdiv(B, TB)

    # ---- hidden tiling (VMEM guard for huge H, and v7x megacore feed) -------
    min_th = max(128, 512 // itemsize)                # keep DMA rows >= 512 B
    can_split_h = (H % 128 == 0) and (H >= 2 * min_th)
    need_split_h = TB * min(S, 128) * H * itemsize > block_bytes
    nh = 1
    if can_split_h:
        if need_split_h:
            nh = pl.cdiv(TB * min(S, 128) * H * itemsize, block_bytes)
        if nb == 1:                                   # single batch block: split H
            nh = max(nh, 2)                           # so the 2nd v7x core gets work
        nh = max(1, min(nh, H // min_th))
    TH = _round_up(pl.cdiv(H, nh), 128) if nh > 1 else H
    nh = pl.cdiv(H, TH)

    # ---- sequence tiling (reduction axis, last in the grid) -----------------
    ts_cap = max(1, block_bytes // (TB * TH * itemsize))
    if S <= ts_cap:
        TS = S
    else:
        # Balanced tiles minimize zero-padding streamed from HBM.
        TS = max(128, _round_up(pl.cdiv(S, pl.cdiv(S, ts_cap)), 128))
    ns = pl.cdiv(S, TS)
    mask_seq_edge = (S % TS) != 0

    kernel = functools.partial(_mean_pool_kernel, seq_len=S, block_seq=TS,
                               mask_seq_edge=mask_seq_edge, precision=precision)

    # VMEM budget: double-buffered inputs/outputs + accumulators + headroom.
    h_blk = TB * TS * TH * itemsize
    m_blk = TB * TS * itemsize
    o_blk = TB * TH * 4
    acc_b = TB * TH * 4 + TB * 128 * 4
    vmem_limit = int(max(2 * (h_blk + m_blk + o_blk) + acc_b + (2 << 20), 32 << 20))

    cost = pl.CostEstimate(
        flops=2 * B * S * H,
        transcendentals=0,
        bytes_accessed=B * S * H * itemsize + B * S * itemsize + B * H * 4,
    )

    out = pl.pallas_call(
        kernel,
        out_shape=jax.ShapeDtypeStruct((B, H), jnp.float32),
        grid_spec=pltpu.PrefetchScalarGridSpec(
            num_scalar_prefetch=0,
            grid=(nb, nh, ns),
            in_specs=[
                pl.BlockSpec((TB, TS, TH), lambda b, hh, s: (b, s, hh)),
                pl.BlockSpec((TB, TS), lambda b, hh, s: (b, s)),
            ],
            out_specs=pl.BlockSpec((TB, TH), lambda b, hh, s: (b, hh)),
            scratch_shapes=[
                pltpu.VMEM((TB, TH), jnp.float32),   # sum_embeddings accumulator
                pltpu.VMEM((TB, 1), jnp.float32),    # sum_mask accumulator
            ],
        ),
        compiler_params=pltpu.CompilerParams(
            dimension_semantics=("parallel", "parallel", "arbitrary"),
            vmem_limit_bytes=vmem_limit,
        ),
        cost_estimate=cost,
    )(h, m)

    return out


def _reference(last_hidden_state, attention_mask):
    # Pure-JAX reference mirroring the PyTorch forward.
    m = attention_mask[..., None].astype(jnp.float32)                  # [B, S, 1]
    sum_emb = jnp.sum(last_hidden_state.astype(jnp.float32) * m, axis=1)
    sum_mask = jnp.maximum(jnp.sum(m, axis=1), 1e-9)                   # clamp(min=1e-9)
    return sum_emb / sum_mask


if __name__ == "__main__":
    key = jax.random.PRNGKey(0)
    k1, k2 = jax.random.split(key)

    B, S, H = 2, 8, 32
    # Values exactly representable in bf16 so the correctness check is
    # insensitive to the MXU's f32 input-pass precision.
    last_hidden_state = jax.random.normal(k1, (B, S, H), dtype=jnp.float32)
    last_hidden_state = last_hidden_state.astype(jnp.bfloat16).astype(jnp.float32)
    # 0/1 attention mask (ints, like a HF tokenizer would produce).
    attention_mask = (jax.random.uniform(k2, (B, S)) > 0.3).astype(jnp.int32)

    out = mean_pooling(last_hidden_state, attention_mask)
    out = jax.block_until_ready(out)

    ref = _reference(last_hidden_state, attention_mask)
    assert out.shape == (B, H)
    err = jnp.max(jnp.abs(out - ref))
    assert jnp.allclose(out, ref, atol=1e-5, rtol=1e-5), f"mismatch vs reference, max abs err={err}"

    print("KERNEL_OK")
</pallas_src>

<mosaic_0001>
module attributes {stable_mosaic.version = 11 : i64} {
  func.func @_mean_pool_kernel(%arg0: i32, %arg1: i32, %arg2: i32, %arg3: memref<2x8x32xf32, #tpu.memory_space<vmem>>, %arg4: memref<2x8xf32, #tpu.memory_space<vmem>>, %arg5: memref<2x32xf32, #tpu.memory_space<vmem>>, %arg6: memref<2x32xf32, #tpu.memory_space<vmem>>, %arg7: memref<2x1xf32, #tpu.memory_space<vmem>>) attributes {dimension_semantics = [#tpu.dimension_semantics<parallel>, #tpu.dimension_semantics<parallel>, #tpu.dimension_semantics<arbitrary>], iteration_bounds = array<i64: 1, 1, 1>, scalar_prefetch = 0 : i64, scratch_operands = 2 : i64, tpu.core_type = #tpu.core_type<tc>, window_params = [{transform_indices = @transform_0, window_bounds = array<i64: 2, 8, 32>}, {transform_indices = @transform_1, window_bounds = array<i64: 2, 8>}, {transform_indices = @transform_2, window_bounds = array<i64: 2, 32>}]} {
    %c0_i32 = arith.constant 0 : i32
    %0 = arith.cmpi eq, %arg2, %c0_i32 : i32
    %1 = arith.extui %0 : i1 to i32
    %c0_i32_0 = arith.constant 0 : i32
    %2 = arith.cmpi ne, %1, %c0_i32_0 : i32
    scf.if %2 {
      %cst_16 = arith.constant 0.000000e+00 : f32
      %19 = vector.broadcast %cst_16 : f32 to vector<2x32xf32>
      %c0_17 = arith.constant 0 : index
      %c0_18 = arith.constant 0 : index
      %20 = vector.load %arg6[%c0_17, %c0_18] : memref<2x32xf32, #tpu.memory_space<vmem>>, vector<2x32xf32>
      tpu.vector_store %arg6[%c0_17, %c0_18], %19 {strides = array<i32>} : memref<2x32xf32, #tpu.memory_space<vmem>>, vector<2x32xf32>,
      %cst_19 = arith.constant 0.000000e+00 : f32
      %21 = vector.broadcast %cst_19 : f32 to vector<2x1xf32>
      %c0_20 = arith.constant 0 : index
      %c0_21 = arith.constant 0 : index
      %22 = vector.load %arg7[%c0_20, %c0_21] : memref<2x1xf32, #tpu.memory_space<vmem>>, vector<2x1xf32>
      tpu.vector_store %arg7[%c0_20, %c0_21], %21 {strides = array<i32>} : memref<2x1xf32, #tpu.memory_space<vmem>>, vector<2x1xf32>,
    } else {
    }
    %c0 = arith.constant 0 : index
    %c0_1 = arith.constant 0 : index
    %c0_2 = arith.constant 0 : index
    %3 = vector.load %arg3[%c0, %c0_1, %c0_2] : memref<2x8x32xf32, #tpu.memory_space<vmem>>, vector<2x8x32xf32>
    %c0_3 = arith.constant 0 : index
    %c0_4 = arith.constant 0 : index
    %4 = vector.load %arg4[%c0_3, %c0_4] : memref<2x8xf32, #tpu.memory_space<vmem>>, vector<2x8xf32>
    %5 = vector.shape_cast %4 : vector<2x8xf32> to vector<2x1x8xf32>
    "tpu.trace_start"() <{level = 10 : i32, message = "bqs,bsh->bqh"}> : () -> ()
    %cst = arith.constant dense<0.000000e+00> : vector<2x1x32xf32>
    %6 = tpu.matmul %5, %3, %cst {dimension_numbers = #tpu.dot_dimension_numbers<[2], [1], [1], [2], [0, 0, 0, 1, 1, 2], [0], [0]>} : vector<2x1x8xf32>, vector<2x8x32xf32>, vector<2x1x32xf32> -> vector<2x1x32xf32>
    "tpu.trace_stop"() : () -> ()
    %c0_5 = arith.constant 0 : index
    %c0_6 = arith.constant 0 : index
    %7 = vector.load %arg6[%c0_5, %c0_6] : memref<2x32xf32, #tpu.memory_space<vmem>>, vector<2x32xf32>
    %8 = vector.shape_cast %6 : vector<2x1x32xf32> to vector<2x32xf32>
    %9 = arith.addf %7, %8 : vector<2x32xf32>
    %c0_7 = arith.constant 0 : index
    %c0_8 = arith.constant 0 : index
    %10 = vector.load %arg6[%c0_7, %c0_8] : memref<2x32xf32, #tpu.memory_space<vmem>>, vector<2x32xf32>
    tpu.vector_store %arg6[%c0_7, %c0_8], %9 {strides = array<i32>} : memref<2x32xf32, #tpu.memory_space<vmem>>, vector<2x32xf32>,
    %c0_9 = arith.constant 0 : index
    %c0_10 = arith.constant 0 : index
    %11 = vector.load %arg7[%c0_9, %c0_10] : memref<2x1xf32, #tpu.memory_space<vmem>>, vector<2x1xf32>
    %cst_11 = arith.constant dense<0.000000e+00> : vector<2xf32>
    %12 = vector.multi_reduction <add>, %4, %cst_11 [1] : vector<2x8xf32> to vector<2xf32>
    %13 = vector.shape_cast %12 : vector<2xf32> to vector<2x1xf32>
    %14 = arith.addf %11, %13 : vector<2x1xf32>
    %c0_12 = arith.constant 0 : index
    %c0_13 = arith.constant 0 : index
    %15 = vector.load %arg7[%c0_12, %c0_13] : memref<2x1xf32, #tpu.memory_space<vmem>>, vector<2x1xf32>
    tpu.vector_store %arg7[%c0_12, %c0_13], %14 {strides = array<i32>} : memref<2x1xf32, #tpu.memory_space<vmem>>, vector<2x1xf32>,
    %c0_i32_14 = arith.constant 0 : i32
    %16 = arith.cmpi eq, %arg2, %c0_i32_14 : i32
    %17 = arith.extui %16 : i1 to i32
    %c0_i32_15 = arith.constant 0 : i32
    %18 = arith.cmpi ne, %17, %c0_i32_15 : i32
    scf.if %18 {
      %c0_16 = arith.constant 0 : index
      %c0_17 = arith.constant 0 : index
      %19 = vector.load %arg7[%c0_16, %c0_17] : memref<2x1xf32, #tpu.memory_space<vmem>>, vector<2x1xf32>
      %cst_18 = arith.constant 9.99999971E-10 : f32
      %20 = vector.broadcast %cst_18 : f32 to vector<2x1xf32>
      %21 = arith.maximumf %19, %20 : vector<2x1xf32>
      %c0_19 = arith.constant 0 : index
      %c0_20 = arith.constant 0 : index
      %22 = vector.load %arg6[%c0_19, %c0_20] : memref<2x32xf32, #tpu.memory_space<vmem>>, vector<2x32xf32>
      %23 = vector.broadcast %21 : vector<2x1xf32> to vector<2x32xf32>
      %24 = arith.divf %22, %23 : vector<2x32xf32>
      %c0_21 = arith.constant 0 : index
      %c0_22 = arith.constant 0 : index
      %25 = vector.load %arg5[%c0_21, %c0_22] : memref<2x32xf32, #tpu.memory_space<vmem>>, vector<2x32xf32>
      tpu.vector_store %arg5[%c0_21, %c0_22], %24 {strides = array<i32>} : memref<2x32xf32, #tpu.memory_space<vmem>>, vector<2x32xf32>,
    } else {
    }
    return
  }
  func.func @transform_0(%arg0: i32, %arg1: i32, %arg2: i32) -> (i32, i32, i32) {
    %c0_i32 = arith.constant 0 : i32
    return %arg0, %arg2, %arg1 : i32, i32, i32
  }
  func.func @transform_1(%arg0: i32, %arg1: i32, %arg2: i32) -> (i32, i32) {
    %c0_i32 = arith.constant 0 : i32
    return %arg0, %arg2 : i32, i32
  }
  func.func @transform_2(%arg0: i32, %arg1: i32, %arg2: i32) -> (i32, i32) {
    %c0_i32 = arith.constant 0 : i32
    return %arg0, %arg1 : i32, i32
  }
}

</mosaic_0001>

<bundles_post_ra>
// kernel: tpu_custom_call.1
= control target key start
LH: loop header
LB: loop body
LE: loop exit
PB: predicated region body
PF: predicated region fallthrough
CT: control target
= control target key end

     0   :  { %7 = vsyncpa [#allocation5], 0  ;;  %s397_s0 = inlined_call_operand.hbm [shape: f32[2,8,32], index: 0, kind: input, shape index: {}]   ;;  %s398_s1 = inlined_call_operand.hbm [shape: f32[2,8], index: 1, kind: input, shape index: {}]   ;;  %s399_s2 = inlined_call_operand.hbm [shape: f32[2,32], index: 2, kind: output, shape index: {}]  }
   0x1   :  { %8 = vsyncpa [#allocation8], 0 }
   0x2   :  { %9 = vsyncpa [#allocation6], 0  ;;  %s359_s9 = smov [#allocation4]  }
   0x3   :  { %s15_s10 = sshll.u32 %s359_s9, 4  ;;  %s16_s10 = int_to_ptr.vmem [resolvable:$true] %s15_s10 }
   0x4   :  { %s301_s11 = scalar_lea.vmem %s16_s10, 256  ;;  %p306_p1 = scmp.lt.s32.totalorder %s16_s10, %s16_s10 }
   0x5   :  { %p302_p0 = scmp.ne.s32.totalorder %s16_s10, %s301_s11  ;;  %p307_p2 = scmp.lt.s32.totalorder %s301_s11, %s301_s11 }
   0x7   :  { %p308_p3 = por %p307_p2, %p306_p1 }
   0x9   :  { %p309_p4 = pnand %p308_p3, %p302_p0 }
   0xb   :  { %312 = shalt.err (!%p309_p4)
}
   0xc   :  { %s360_s12 = smov 128   ;;  %s361_s13 = smov 8  }
   0xd   :  { %21 = dma.hbm_to_vmem [thread:$0]  %s397_s0, 256, %s16_s10, [#allocation5], %s360_s12, %s360_s12, %s361_s13  }
   0xe   :  { %s362_s16 = smov [#allocation7]  }
   0xf   :  { %s28_s17 = sshll.u32 %s362_s16, 4  ;;  %s29_s17 = int_to_ptr.vmem [resolvable:$true] %s28_s17 }
  0x10   :  { %s321_s18 = scalar_lea.vmem %s29_s17, 32  ;;  %p326_p6 = scmp.lt.s32.totalorder %s29_s17, %s29_s17 }
  0x11   :  { %p322_p5 = scmp.ne.s32.totalorder %s29_s17, %s321_s18  ;;  %p327_p7 = scmp.lt.s32.totalorder %s321_s18, %s321_s18 }
  0x13   :  { %p328_p8 = por %p327_p7, %p326_p6 }
  0x15   :  { %p329_p9 = pnand %p328_p8, %p322_p5 }
  0x17   :  { %332 = shalt.err (!%p329_p9)
}
  0x18   :  { %31 = dma.hbm_to_vmem [thread:$0]  %s398_s1, 32, %s29_s17, [#allocation8]  }
  0x19   :  { %353 = dma.done.wait [#allocation5], 256  }
  0x1a   :  { %354 = vsyncadd [#allocation5], 4294967040 }
  0x1b   :  { %355 = dma.done.wait [#allocation8], 32  }
  0x1c   :  { %356 = vsyncadd [#allocation8], 4294967264  ;;  %v53_v0 = vlaneseq  ;;  %v363_v1 = vmov 1966171168   ;;  %v364_v3 = vmov 0.0   ;;  %vm44_vm0 = vcmask 1024  }
  0x1d   :  { %v51_v2 = vunpack.c.l.s4 %v363_v1  ;;  %276 = vmatprep.subr.mxu1 %v364_v3  ;;  %271 = vmatprep.subr.mxu0 %v364_v3  ;;  %vm365_vm1 = vmmov 0   ;;  %45 = vst.msk [vmem:[#allocation3] sm:$0x3] %vm44_vm0, %v364_v3  ;;  %vm228_vm2 = vcmask 58368   ;;  %v48_v7 = vld [vmem:[#allocation7] sm:$0x3] }
  0x1e   :  { %v54_v4 = vshrl.u32 %v53_v0, 7  ;;  %278 = vmatprep.mubr.msk.f32.mxu1 %vm365_vm1, %v364_v3  ;;  %273 = vmatprep.mubr.msk.f32.mxu0 %vm365_vm1, %v364_v3  ;;  %v47_v8 = vld [vmem:[#allocation4 + $0x8] sm:$0xff]  ;;  %v46_v9 = vld [vmem:[#allocation4] sm:$0xff]  ;;  %v229_v10 = vsel %vm228_vm2, %v48_v7, 0.0  ;;  %vm72_vm3 = vcmask 64512   ;;  %v366_v15 = vmov 0  }
  0x1f   :  { %v52_v5 = vunpack.c.0.s8 %v51_v2  ;;  %277 = vmatpush3.msra.mxu1 %v47_v8  ;;  %272 = vmatpush3.msra.mxu0 %v46_v9  ;;  %vm42_vm4 = vcmask 254976   ;;  %vm221_vm5 = vcmask 1041409   ;;  %s367_s0 = smov [#allocation9]  }
  0x20   :  { %230 = vadd.xlane.f32.xlu0 %v229_v10  ;;  %43 = vst.msk [vmem:[#allocation2] sm:$0x3] %vm42_vm4, %v364_v3  ;;  %s255_s1 = sshll.u32 %s367_s0, 4  ;;  %s256_s1 = int_to_ptr.vmem [resolvable:$true] %s255_s1 }
  0x21   :  { %v55_v6 = vsub.s32 %v52_v5, %v54_v4  ;;  %290 = vset.pattern.permute.xlu0 %v366_v15  ;;  %s333_s21 = scalar_lea.vmem %s256_s1, 32  ;;  %p338_p11 = scmp.lt.s32.totalorder %s256_s1, %s256_s1 }
  0x22   :  { %p334_p10 = scmp.ne.s32.totalorder %s256_s1, %s333_s21  ;;  %p339_p12 = scmp.lt.s32.totalorder %s333_s21, %s333_s21 }
  0x23   :  { %v56_v11 = vrot.slane %v48_v7, %v55_v6 }
  0x24   :  { %v227_v16 = vld [vmem:[#allocation3] sm:$0x3]  ;;  %p340_p13 = por %p339_p12, %p338_p11 }
  0x25   :  { %v57_v12 = vcombine.high %v56_v11, %v56_v11  ;;  %v64_v13 = vrot.slane %v56_v11, %v55_v6 }
  0x26   :  { %p341_p0 = pnand %p340_p13, %p334_p10 }
  0x27   :  { %v71_v14 = vrot.slane %v57_v12, %v55_v6  ;;  %274 = vmatmul.mubr.msk.f32.vlgmr.msra.gmra.mxu0 %vm72_vm3, %v64_v13  ;;  %v217_v25 = vld [vmem:[#allocation2] sm:$0x3] }
  0x29   :  { %279 = vmatmul.mubr.msk.f32.vlgmr.msra.gmra.mxu1 %vm72_vm3, %v71_v14 }
  0xa9   :  { %v231_v17 = vpop.xlane.xlu0 %230 }
  0xaa   :  { %v232_v18 = vadd.f32 %v231_v17, %v227_v16 }
  0xac   :  { %234 = vst.msk [vmem:[#allocation3] sm:$0x3] %vm44_vm0, %v232_v18 }
  0xb3   :  { %v238_v19 = vld [vmem:[#allocation3] sm:$0x3] }
  0xb4   :  { %v239_v20 = vmax.f32 %v238_v19, 1e-09 }
  0xb6   :  { %243 = vperm.xlu0 %290, %v239_v20  }
  0xe7   :  { %v141_v21 = vpop.f32.mrf.mxu0 }
  0xe9   :  { %v213_v22 = vpop.f32.mrf.mxu1  ;;  %v275_v23 = vpop.f32.mrf.mxu0 }
  0xea   :  { %v220_v24 = vrot.slane %v213_v22, 7 }
  0xeb   :  { %v280_v26 = vpop.f32.mrf.mxu1 }
  0xec   :  { %v222_v27 = vsel %vm221_vm5, %v220_v24, %v141_v21 }
  0xed   :  { %v224_v28 = vadd.f32 %v222_v27, %v217_v25 }
  0xef   :  { %226 = vst.msk [vmem:[#allocation2] sm:$0x3] %vm42_vm4, %v224_v28 }
  0xf6   :  { %v240_v30 = vld [vmem:[#allocation2] sm:$0x3] }
 0x131   :  { %v244_v29 = vpop.permute.xlu0 %243 }
 0x132   :  { %291 = vrcp.f32 %v244_v29 }
 0x13f   :  { %v292_v31 = vpop.eup %291 }
 0x140   :  { %v247_v32 = vmul.f32 %v292_v31, %v240_v30 }
 0x142   :  { %248 = vst.msk [vmem:[#allocation9] sm:$0x3] %vm42_vm4, %v247_v32 }
 0x143   :  { %344 = shalt.err (!%p341_p0)
}
 0x144   :  { %258 = dma.vmem_to_hbm [thread:$0]  %s256_s1, 32, %s399_s2, [#allocation6]  }
 0x145   :  { %357 = dma.done.wait [#allocation6], 32  }
 0x146   :  { %358 = vsyncadd [#allocation6], 4294967264 }
 0x147   :  { %262 = vsyncpa [#allocation5], 1 }
 0x148   :  { %263 = vsyncpa [#allocation8], 1 }
 0x149   :  { %264 = vsyncpa [#allocation6], 1 }

</bundles_post_ra>
